<compile_context>
chip_gen: v6e
topology: v6e:2x2x1
jax: 0.10.0
libtpu: 0.0.40
codegen_flags: <defaults>
</compile_context>

<pallas_src>
import jax
import jax.numpy as jnp
from jax.experimental import pallas as pl
from jax.experimental.pallas import tpu as pltpu


def _hbm_copy_kernel(x_hbm_ref, o_hbm_ref, sem):
    # Single contiguous HBM->HBM DMA: no VMEM staging, no grid, no tiling.
    cp = pltpu.make_async_copy(x_hbm_ref, o_hbm_ref, sem)
    cp.start()
    cp.wait()


def _hbm_identity_copy(x):
    """Materialize a physically distinct copy of `x` via one HBM->HBM DMA."""
    nbytes = x.size * jnp.dtype(x.dtype).itemsize
    return pl.pallas_call(
        _hbm_copy_kernel,
        out_shape=jax.ShapeDtypeStruct(x.shape, x.dtype),
        in_specs=[pl.BlockSpec(memory_space=pl.ANY)],
        out_specs=pl.BlockSpec(memory_space=pl.ANY),
        scratch_shapes=[pltpu.SemaphoreType.DMA(())],
        cost_estimate=pl.CostEstimate(
            flops=0, transcendentals=0, bytes_accessed=2 * nbytes
        ),
    )(x)


def cvm_encoder_forward(inputs, materialize_copy=False):
    """Pallas equivalent of CVMEncoder.forward.

    :param inputs: dict with key 'target_agent_representation' of shape [B, T, D]
    :param materialize_copy: if False (default, fastest), return the input
        array directly — the reference module is a pure pass-through, so any
        kernel is pure overhead.  If True, produce a physically distinct
        output buffer via a single direct HBM->HBM Pallas DMA.
    :return: dict with key 'feats' (identical values, same shape/dtype)
    """
    x = inputs["target_agent_representation"]
    # TODO(synk): 'surrounding_agent_representation' and 'map_representation'
    # are accepted by the PyTorch forward but unused; ignored here too.

    if not materialize_copy:
        return {"feats": x}

    return {"feats": _hbm_identity_copy(x)}


if __name__ == "__main__":
    key = jax.random.PRNGKey(0)
    B, T, D = 2, 8, 32  # small shapes: batch=2, history length=8, feat dim=32

    k1, k2, k3 = jax.random.split(key, 3)
    inputs = {
        "target_agent_representation": jax.random.normal(k1, (B, T, D), jnp.float32),
        "surrounding_agent_representation": jax.random.normal(k2, (B, 4, T, D), jnp.float32),
        "map_representation": jax.random.normal(k3, (B, 16, D), jnp.float32),
    }
    x = inputs["target_agent_representation"]

    # 1) Default (fastest) path: pure pass-through, no kernel, no HBM traffic.
    out_fast = cvm_encoder_forward(inputs)
    assert out_fast["feats"] is x

    # 2) Materialized-copy path: single HBM->HBM DMA on the small tensor.
    out_copy = cvm_encoder_forward(inputs, materialize_copy=True)
    feats = jax.block_until_ready(out_copy["feats"])
    assert feats.shape == x.shape and feats.dtype == x.dtype
    assert jnp.array_equal(feats, x)

    # 3) Same DMA path on a moderately larger tensor (multi-MiB copy).
    x_big = jax.random.normal(jax.random.PRNGKey(1), (8192, T, D), jnp.float32)
    out_big = cvm_encoder_forward(
        {"target_agent_representation": x_big}, materialize_copy=True
    )
    feats_big = jax.block_until_ready(out_big["feats"])
    assert feats_big.shape == x_big.shape and feats_big.dtype == x_big.dtype
    assert jnp.array_equal(feats_big, x_big)

    print("KERNEL_OK")
</pallas_src>

<mosaic_0001>
module attributes {stable_mosaic.version = 11 : i64} {
  func.func @_hbm_copy_kernel(%arg0: memref<2x8x32xf32, #tpu.memory_space<any>>, %arg1: memref<2x8x32xf32, #tpu.memory_space<any>>, %arg2: memref<!tpu.dma_semaphore, #tpu.memory_space<semaphore_mem>>) attributes {dimension_semantics = [], scalar_prefetch = 0 : i64, scratch_operands = 1 : i64, tpu.core_type = #tpu.core_type<tc>} {
    tpu.enqueue_dma source(%arg0 : memref<2x8x32xf32, #tpu.memory_space<any>>) target(%arg1 : memref<2x8x32xf32, #tpu.memory_space<any>>) target_semaphore(%arg2 : memref<!tpu.dma_semaphore, #tpu.memory_space<semaphore_mem>>)
    tpu.wait_dma2 semaphore(%arg2 : memref<!tpu.dma_semaphore, #tpu.memory_space<semaphore_mem>>) src(%arg0 : memref<2x8x32xf32, #tpu.memory_space<any>>) dst(%arg1 : memref<2x8x32xf32, #tpu.memory_space<any>>)
    return
  }
}

</mosaic_0001>

<bundles_post_ra>
// kernel: tpu_custom_call.1
= control target key start
LH: loop header
LB: loop body
LE: loop exit
PB: predicated region body
PF: predicated region fallthrough
CT: control target
= control target key end

     0   :  { %s29_s6 = smov [#allocation2]   ;;  %s30_s7 = smov 131072   ;;  %s48_s0 = inlined_call_operand.hbm [shape: f32[2,8,32], index: 0, kind: input, shape index: {}]   ;;  %s49_s1 = inlined_call_operand.hbm [shape: f32[2,8,32], index: 1, kind: output, shape index: {}]  }
   0x1   :  { %s31_s8 = smov 0  }
   0x2   :  { %12 = dma.general %s48_s0, 256, %s49_s1, %s29_s6, %s30_s7, [#allocation4], %s31_s8, 0  }
   0x3   :  { %27 = dma.done.wait [#allocation2], 256 }
   0x4   :  { %28 = vsyncadd [#allocation2], 4294967040 }
   0x5   :  { %17 = vsyncmov [#allocation2] }
   0x8   :  { %s18_s13 = vpop.sfrf %17 }
   0x9   :  { %p23_p0 = scmp.ne.s32.totalorder %s18_s13, 0 }
   0xb   :  { %22 = shalt.err (%p23_p0)  }

</bundles_post_ra>
